<compile_context>
chip_gen: v5e
topology: v5e:2x2
jax: 0.10.0
libtpu: 0.0.40
codegen_flags: <defaults>
</compile_context>

<pallas_src>
import functools

import jax
import jax.numpy as jnp
import numpy as np
from jax.experimental import pallas as pl
from jax.experimental.pallas import tpu as pltpu


def _round_up(a, b):
    return (a + b - 1) // b * b


def _default_token_tile():
    # Per-generation sizing (perf review): v6e needs TT ~ 768-1024 to clear
    # its ~650 FLOP/B roofline; v7x has only 64 MiB VMEM/TC so ~512 is the
    # sweet spot; v5e is already fine at 256-512.
    try:
        kind = jax.devices()[0].device_kind.lower()
    except Exception:  # pragma: no cover - defensive
        return 512
    if "v6" in kind:
        return 1024
    return 512


def _moe_ffn_kernel(sched_ref, nact_ref, x_ref, w1_ref, w2_ref, g_ref,
                    o_ref, acc_ref, *, approximate_gelu):
    """One grid step = (token tile t, expert slot j, dff chunk f).

    sched_ref: (nt*ME,) int32 SMEM — compacted expert schedule per tile
    nact_ref:  (nt,)    int32 SMEM — # active experts per tile
    x_ref:     (TT, D)   compute dtype — token tile (resident across j, f)
    w1_ref:    (1, D, DT) compute dtype — up-proj chunk of scheduled expert
    w2_ref:    (1, DT, D) compute dtype — down-proj chunk of scheduled expert
    g_ref:     (1, TT, 1) f32 — per-token gate for the scheduled expert
    o_ref:     (TT, D)        — output tile (resident across j, f)
    acc_ref:   (TT, D) f32 VMEM scratch — accumulator across j, f
    """
    t = pl.program_id(0)
    j = pl.program_id(1)
    f = pl.program_id(2)
    nj = pl.num_programs(1)
    nf = pl.num_programs(2)

    @pl.when(jnp.logical_and(j == 0, f == 0))
    def _():
        acc_ref[...] = jnp.zeros_like(acc_ref)

    # Padding slots (j >= nact[t]) do no MXU work; their weight DMAs are
    # elided because the index_maps repeat the previous block index.
    @pl.when(j < nact_ref[t])
    def _():
        x = x_ref[...]                       # (TT, D)   bf16
        w1 = w1_ref[0]                       # (D, DT)   bf16  (K, N) layout
        w2 = w2_ref[0]                       # (DT, D)   bf16  (K, N) layout

        # h = x @ W1_chunk   (contract shared D dim; canonical RHS layout)
        h = jax.lax.dot_general(
            x, w1, dimension_numbers=(((1,), (0,)), ((), ())),
            preferred_element_type=jnp.float32)           # (TT, DT) f32
        h = jax.nn.gelu(h, approximate=approximate_gelu)
        # TODO(synk): dropout is identity here (p=0 / eval); train-mode
        # dropout RNG is not reproduced.
        # Gate folded into the (TT, DT) activations — far cheaper than gating
        # the (TT, D) accumulator update each step.
        h = (g_ref[0] * h).astype(x.dtype)
        # y = h @ W2_chunk   (contract shared DT dim)
        acc_ref[...] += jax.lax.dot_general(
            h, w2, dimension_numbers=(((1,), (0,)), ((), ())),
            preferred_element_type=jnp.float32)           # (TT, D) f32

    @pl.when(jnp.logical_and(j == nj - 1, f == nf - 1))
    def _():
        o_ref[...] = acc_ref[...].astype(o_ref.dtype)


def moe_feedforward(x, w1, w2, expert_probs, expert_indices, *,
                    token_tile=None, dff_tile=512,
                    compute_dtype=jnp.bfloat16, approximate_gelu=True,
                    vmem_limit_bytes=None):
    """x: (B, S, D); w1: (E, DFF, D); w2: (E, D, DFF);
    expert_probs / expert_indices: (B, S, K).  Returns (B, S, D) in x.dtype."""
    B, S, D = x.shape
    E, DFF, D_in = w1.shape
    assert D_in == D and w2.shape == (E, D, DFF)
    K = expert_indices.shape[-1]
    T = B * S
    out_dtype = x.dtype

    # ---- tile sizes -------------------------------------------------------
    if token_tile is None:
        token_tile = _default_token_tile()
    TT = min(token_tile, _round_up(T, 8))            # token tile (mult of 8)
    # Prefer >= 2 token tiles so the "parallel" axis can shard across v7x's
    # two TensorCores (nt=1 would idle the second core).
    if T >= 16 and _round_up(T, TT) // TT < 2:
        TT = _round_up((T + 1) // 2, 8)
    Tp = _round_up(T, TT)
    nt = Tp // TT

    if DFF <= dff_tile:
        DT, DFFp, nf = DFF, DFF, 1
    else:
        DT = _round_up(min(dff_tile, DFF), 128)      # lane-dense DFF chunk
        DFFp = _round_up(DFF, DT)
        nf = DFFp // DT

    ME = min(E, TT * K)      # max distinct experts a tile of TT tokens can hit

    # ---- operand preparation (plain XLA, outside the kernel) --------------
    x2 = jnp.pad(x.reshape(T, D), ((0, Tp - T), (0, 0))).astype(compute_dtype)

    # Canonical (K, N) RHS layouts: lane-dense weight DMAs, no transposed MXU
    # staging.  (In a real model, store the weights pre-transposed.)
    w1t = jnp.swapaxes(w1, 1, 2).astype(compute_dtype)   # (E, D, DFF)
    w2t = jnp.swapaxes(w2, 1, 2).astype(compute_dtype)   # (E, DFF, D)
    if DFFp != DFF:
        # Zero-padding the hidden dim is exact: gelu(x @ 0) = 0 contributes 0.
        w1t = jnp.pad(w1t, ((0, 0), (0, 0), (0, DFFp - DFF)))
        w2t = jnp.pad(w2t, ((0, 0), (0, DFFp - DFF), (0, 0)))

    probs2 = expert_probs.reshape(T, K).astype(jnp.float32)
    idx2 = expert_indices.reshape(T, K).astype(jnp.int32)
    hits = idx2[:, :, None] == jnp.arange(E, dtype=jnp.int32)[None, None, :]
    # Dense gates g[t, e] = sum_{k: idx[t,k]==e} p[t,k]  (same math as the
    # grouped scatter formulation of the PyTorch module).
    gates = jnp.sum(jnp.where(hits, probs2[:, :, None], 0.0), axis=1)   # (T, E)
    gates = jnp.pad(gates, ((0, Tp - T), (0, 0)))                        # (Tp, E)
    routed = jnp.pad(jnp.any(hits, axis=1), ((0, Tp - T), (0, 0)))       # (Tp, E)

    # ---- compacted per-tile expert schedule (1-D scalar prefetch) ---------
    hit = routed.reshape(nt, TT, E).any(axis=1)                          # (nt, E)
    nact = hit.sum(axis=1).astype(jnp.int32)                             # (nt,)
    eids = jnp.arange(E, dtype=jnp.int32)
    sched = jnp.argsort(jnp.where(hit, eids, eids + E), axis=1)          # active first
    sched = sched[:, :ME].astype(jnp.int32)                              # (nt, ME)

    # Per-slot gates: g_sched[t*ME + j, :, 0] = gates[tile t tokens, sched[t, j]]
    gates_t = gates.reshape(nt, TT, E)
    g_sched = jnp.take_along_axis(gates_t, sched[:, None, :], axis=2)    # (nt, TT, ME)
    g_sched = jnp.swapaxes(g_sched, 1, 2).reshape(nt * ME, TT, 1)
    sched_flat = sched.reshape(nt * ME)                                  # 1-D SMEM (no lane padding)

    # ---- index maps (scalar-prefetch refs are trailing positional args) ---
    def _slot(t, j, sched_ref, nact_ref):
        a = nact_ref[t]
        pad = j >= a
        jj = jnp.where(pad, jnp.maximum(a - 1, 0), j)
        return pad, sched_ref[t * ME + jj]

    def w1_map(t, j, f, sched_ref, nact_ref):
        pad, e = _slot(t, j, sched_ref, nact_ref)
        # Padding slots repeat the previous block index -> DMA elided.
        return (e, 0, jnp.where(pad, nf - 1, f))

    def w2_map(t, j, f, sched_ref, nact_ref):
        pad, e = _slot(t, j, sched_ref, nact_ref)
        return (e, jnp.where(pad, nf - 1, f), 0)

    def g_map(t, j, f, sched_ref, nact_ref):
        a = nact_ref[t]
        jj = jnp.where(j >= a, jnp.maximum(a - 1, 0), j)
        return (t * ME + jj, 0, 0)

    # ---- VMEM limit from actual footprint (+ headroom for Mosaic scratch) --
    cb = jnp.dtype(compute_dtype).itemsize
    ob = jnp.dtype(out_dtype).itemsize
    if vmem_limit_bytes is None:
        footprint = (2 * TT * D * cb          # x (double-buffered)
                     + 2 * D * DT * cb        # W1 chunk
                     + 2 * DT * D * cb        # W2 chunk
                     + 2 * TT * 4             # gates
                     + 2 * TT * D * ob        # output tile
                     + TT * D * 4)            # f32 accumulator scratch
        vmem_limit_bytes = min(footprint + 16 * 1024 * 1024,
                               127 * 1024 * 1024)

    kernel = functools.partial(_moe_ffn_kernel,
                               approximate_gelu=approximate_gelu)

    out = pl.pallas_call(
        kernel,
        out_shape=jax.ShapeDtypeStruct((Tp, D), out_dtype),
        grid_spec=pltpu.PrefetchScalarGridSpec(
            num_scalar_prefetch=2,               # schedule + active counts -> SMEM
            grid=(nt, ME, nf),                   # token tiles, expert slots, dff chunks
            in_specs=[
                pl.BlockSpec((TT, D), lambda t, j, f, s, n: (t, 0)),   # x tile
                pl.BlockSpec((1, D, DT), w1_map),                      # W1[e] chunk (K,N)
                pl.BlockSpec((1, DT, D), w2_map),                      # W2[e] chunk (K,N)
                pl.BlockSpec((1, TT, 1), g_map),                       # per-slot gates
            ],
            out_specs=pl.BlockSpec((TT, D), lambda t, j, f, s, n: (t, 0)),
            scratch_shapes=[pltpu.VMEM((TT, D), jnp.float32)],
        ),
        compiler_params=pltpu.CompilerParams(
            dimension_semantics=("parallel", "arbitrary", "arbitrary"),
            vmem_limit_bytes=int(vmem_limit_bytes),
        ),
    )(sched_flat, nact, x2, w1t, w2t, g_sched)

    return out[:T].reshape(B, S, D)


def moe_feedforward_ref(x, w1, w2, expert_probs, expert_indices, *,
                        compute_dtype=jnp.bfloat16, approximate_gelu=True):
    """Pure-JAX reference (gather-per-slot formulation, same compute dtype)."""
    B, S, D = x.shape
    K = expert_indices.shape[-1]
    xf = x.reshape(-1, D).astype(compute_dtype)
    w1c = w1.astype(compute_dtype)
    w2c = w2.astype(compute_dtype)
    pf = expert_probs.reshape(-1, K).astype(jnp.float32)
    ef = expert_indices.reshape(-1, K)
    out = jnp.zeros((xf.shape[0], D), jnp.float32)
    for k in range(K):
        e = ef[:, k]
        h = jnp.einsum('td,tfd->tf', xf, w1c[e],
                       preferred_element_type=jnp.float32)
        h = jax.nn.gelu(h, approximate=approximate_gelu)
        y = jnp.einsum('tf,tdf->td', h.astype(compute_dtype), w2c[e],
                       preferred_element_type=jnp.float32)
        out = out + pf[:, k:k + 1] * y
    return out.astype(x.dtype).reshape(B, S, D)


if __name__ == "__main__":
    # Small shapes consistent with the module's forward.
    B, S, D, DFF = 2, 8, 128, 256
    E, TOP_K = 4, 2

    key = jax.random.PRNGKey(0)
    kx, kw1, kw2, kr = jax.random.split(key, 4)

    x = jax.random.normal(kx, (B, S, D), jnp.float32)
    # Deterministic "init_weights": nn.Linear-style scale.
    w1 = jax.random.normal(kw1, (E, DFF, D), jnp.float32) * (1.0 / np.sqrt(D))
    w2 = jax.random.normal(kw2, (E, D, DFF), jnp.float32) * (1.0 / np.sqrt(DFF))

    # Router: softmax over experts, keep top-k probs + indices.
    logits = jax.random.normal(kr, (B, S, E), jnp.float32)
    router = jax.nn.softmax(logits, axis=-1)
    expert_probs, expert_indices = jax.lax.top_k(router, TOP_K)

    y_ref = moe_feedforward_ref(x, w1, w2, expert_probs, expert_indices)

    # Small explicit tiles: exercises multi-token-tile, multi-DFF-chunk and
    # the padded-slot / DMA-elision paths.
    y = moe_feedforward(x, w1, w2, expert_probs, expert_indices,
                        token_tile=8, dff_tile=128)
    y = jax.block_until_ready(y)
    np.testing.assert_allclose(np.asarray(y), np.asarray(y_ref),
                               rtol=2e-2, atol=2e-2)

    # Default (auto-sized) tiles.
    y2 = moe_feedforward(x, w1, w2, expert_probs, expert_indices)
    y2 = jax.block_until_ready(y2)
    np.testing.assert_allclose(np.asarray(y2), np.asarray(y_ref),
                               rtol=2e-2, atol=2e-2)

    print("KERNEL_OK")
</pallas_src>

<mosaic_0001>
module attributes {stable_mosaic.version = 11 : i64} {
  func.func @_moe_ffn_kernel(%arg0: i32, %arg1: i32, %arg2: i32, %arg3: memref<8xi32, #tpu.memory_space<smem>>, %arg4: memref<2xi32, #tpu.memory_space<smem>>, %arg5: memref<8x128xbf16, #tpu.memory_space<vmem>>, %arg6: memref<1x128x128xbf16, #tpu.memory_space<vmem>>, %arg7: memref<1x128x128xbf16, #tpu.memory_space<vmem>>, %arg8: memref<1x8x1xf32, #tpu.memory_space<vmem>>, %arg9: memref<8x128xf32, #tpu.memory_space<vmem>>, %arg10: memref<8x128xf32, #tpu.memory_space<vmem>>) attributes {dimension_semantics = [#tpu.dimension_semantics<parallel>, #tpu.dimension_semantics<arbitrary>, #tpu.dimension_semantics<arbitrary>], iteration_bounds = array<i64: 2, 4, 2>, scalar_prefetch = 2 : i64, scratch_operands = 1 : i64, tpu.core_type = #tpu.core_type<tc>, window_params = [{transform_indices = @transform_0, window_bounds = array<i64: 8, 128>}, {transform_indices = @transform_1, window_bounds = array<i64: 1, 128, 128>}, {transform_indices = @transform_2, window_bounds = array<i64: 1, 128, 128>}, {transform_indices = @transform_3, window_bounds = array<i64: 1, 8, 1>}, {transform_indices = @transform_4, window_bounds = array<i64: 8, 128>}]} {
    %c0_i32 = arith.constant 0 : i32
    %0 = arith.cmpi eq, %arg1, %c0_i32 : i32
    %c0_i32_0 = arith.constant 0 : i32
    %1 = arith.cmpi eq, %arg2, %c0_i32_0 : i32
    %2 = arith.andi %0, %1 : i1
    %3 = arith.extui %2 : i1 to i32
    %c0_i32_1 = arith.constant 0 : i32
    %4 = arith.cmpi ne, %3, %c0_i32_1 : i32
    scf.if %4 {
      %cst = arith.constant 0.000000e+00 : f32
      %15 = vector.broadcast %cst : f32 to vector<8x128xf32>
      %c0 = arith.constant 0 : index
      %c0_4 = arith.constant 0 : index
      %16 = vector.load %arg10[%c0, %c0_4] : memref<8x128xf32, #tpu.memory_space<vmem>>, vector<8x128xf32>
      tpu.vector_store %arg10[%c0, %c0_4], %15 {strides = array<i32>} : memref<8x128xf32, #tpu.memory_space<vmem>>, vector<8x128xf32>,
    } else {
    }
    %5 = arith.index_cast %arg0 : i32 to index
    %6 = memref.load %arg4[%5] : memref<2xi32, #tpu.memory_space<smem>>
    %7 = arith.cmpi slt, %arg1, %6 : i32
    %8 = arith.extui %7 : i1 to i32
    %c0_i32_2 = arith.constant 0 : i32
    %9 = arith.cmpi ne, %8, %c0_i32_2 : i32
    scf.if %9 {
      %c0 = arith.constant 0 : index
      %c0_4 = arith.constant 0 : index
      %15 = vector.load %arg5[%c0, %c0_4] : memref<8x128xbf16, #tpu.memory_space<vmem>>, vector<8x128xbf16>
      %c0_5 = arith.constant 0 : index
      %c0_6 = arith.constant 0 : index
      %c0_7 = arith.constant 0 : index
      %16 = vector.load %arg6[%c0_5, %c0_6, %c0_7] : memref<1x128x128xbf16, #tpu.memory_space<vmem>>, vector<1x128x128xbf16>
      %17 = vector.shape_cast %16 : vector<1x128x128xbf16> to vector<128x128xbf16>
      %c0_8 = arith.constant 0 : index
      %c0_9 = arith.constant 0 : index
      %c0_10 = arith.constant 0 : index
      %18 = vector.load %arg7[%c0_8, %c0_9, %c0_10] : memref<1x128x128xbf16, #tpu.memory_space<vmem>>, vector<1x128x128xbf16>
      %19 = vector.shape_cast %18 : vector<1x128x128xbf16> to vector<128x128xbf16>
      %cst = arith.constant dense<0.000000e+00> : vector<8x128xf32>
      %20 = tpu.matmul %15, %17, %cst {dimension_numbers = #tpu.dot_dimension_numbers<[1], [0], [0], [1], [0, 0, 1, 1], [], []>} : vector<8x128xbf16>, vector<128x128xbf16>, vector<8x128xf32> -> vector<8x128xf32>
      %21 = arith.mulf %20, %20 : vector<8x128xf32>
      %22 = arith.mulf %20, %21 : vector<8x128xf32>
      %cst_11 = arith.constant 4.471500e-02 : f32
      %23 = vector.broadcast %cst_11 : f32 to vector<8x128xf32>
      %24 = arith.mulf %23, %22 : vector<8x128xf32>
      %25 = arith.addf %20, %24 : vector<8x128xf32>
      %cst_12 = arith.constant 0.797884583 : f32
      %26 = vector.broadcast %cst_12 : f32 to vector<8x128xf32>
      %27 = arith.mulf %26, %25 : vector<8x128xf32>
      %28 = math.tanh %27 : vector<8x128xf32>
      %cst_13 = arith.constant 1.000000e+00 : f32
      %29 = vector.broadcast %cst_13 : f32 to vector<8x128xf32>
      %30 = arith.addf %29, %28 : vector<8x128xf32>
      %cst_14 = arith.constant 5.000000e-01 : f32
      %31 = vector.broadcast %cst_14 : f32 to vector<8x128xf32>
      %32 = arith.mulf %31, %30 : vector<8x128xf32>
      %33 = arith.mulf %20, %32 : vector<8x128xf32>
      %c0_15 = arith.constant 0 : index
      %c0_16 = arith.constant 0 : index
      %c0_17 = arith.constant 0 : index
      %34 = vector.load %arg8[%c0_15, %c0_16, %c0_17] : memref<1x8x1xf32, #tpu.memory_space<vmem>>, vector<1x8x1xf32>
      %35 = vector.shape_cast %34 : vector<1x8x1xf32> to vector<8x1xf32>
      %36 = vector.broadcast %35 : vector<8x1xf32> to vector<8x128xf32>
      %37 = arith.mulf %36, %33 : vector<8x128xf32>
      %38 = arith.truncf %37 : vector<8x128xf32> to vector<8x128xbf16>
      %c0_18 = arith.constant 0 : index
      %c0_19 = arith.constant 0 : index
      %39 = vector.load %arg10[%c0_18, %c0_19] : memref<8x128xf32, #tpu.memory_space<vmem>>, vector<8x128xf32>
      %cst_20 = arith.constant dense<0.000000e+00> : vector<8x128xf32>
      %40 = tpu.matmul %38, %19, %cst_20 {dimension_numbers = #tpu.dot_dimension_numbers<[1], [0], [0], [1], [0, 0, 1, 1], [], []>} : vector<8x128xbf16>, vector<128x128xbf16>, vector<8x128xf32> -> vector<8x128xf32>
      %41 = arith.addf %39, %40 : vector<8x128xf32>
      %c0_21 = arith.constant 0 : index
      %c0_22 = arith.constant 0 : index
      %42 = vector.load %arg10[%c0_21, %c0_22] : memref<8x128xf32, #tpu.memory_space<vmem>>, vector<8x128xf32>
      tpu.vector_store %arg10[%c0_21, %c0_22], %41 {strides = array<i32>} : memref<8x128xf32, #tpu.memory_space<vmem>>, vector<8x128xf32>,
    } else {
    }
    %c3_i32 = arith.constant 3 : i32
    %10 = arith.cmpi eq, %arg1, %c3_i32 : i32
    %c1_i32 = arith.constant 1 : i32
    %11 = arith.cmpi eq, %arg2, %c1_i32 : i32
    %12 = arith.andi %10, %11 : i1
    %13 = arith.extui %12 : i1 to i32
    %c0_i32_3 = arith.constant 0 : i32
    %14 = arith.cmpi ne, %13, %c0_i32_3 : i32
    scf.if %14 {
      %c0 = arith.constant 0 : index
      %c0_4 = arith.constant 0 : index
      %15 = vector.load %arg10[%c0, %c0_4] : memref<8x128xf32, #tpu.memory_space<vmem>>, vector<8x128xf32>
      %c0_5 = arith.constant 0 : index
      %c0_6 = arith.constant 0 : index
      %16 = vector.load %arg9[%c0_5, %c0_6] : memref<8x128xf32, #tpu.memory_space<vmem>>, vector<8x128xf32>
      tpu.vector_store %arg9[%c0_5, %c0_6], %15 {strides = array<i32>} : memref<8x128xf32, #tpu.memory_space<vmem>>, vector<8x128xf32>,
    } else {
    }
    return
  }
  func.func @transform_0(%arg0: i32, %arg1: i32, %arg2: i32, %arg3: memref<8xi32, #tpu.memory_space<smem>>, %arg4: memref<2xi32, #tpu.memory_space<smem>>) -> (i32, i32) {
    %c0_i32 = arith.constant 0 : i32
    %c0_i32_0 = arith.constant 0 : i32
    return %arg0, %c0_i32 : i32, i32
  }
  func.func @transform_1(%arg0: i32, %arg1: i32, %arg2: i32, %arg3: memref<8xi32, #tpu.memory_space<smem>>, %arg4: memref<2xi32, #tpu.memory_space<smem>>) -> (i32, i32, i32) {
    %0 = arith.index_cast %arg0 : i32 to index
    %1 = memref.load %arg4[%0] : memref<2xi32, #tpu.memory_space<smem>>
    %2 = arith.cmpi sge, %arg1, %1 : i32
    %c1_i32 = arith.constant 1 : i32
    %3 = arith.subi %1, %c1_i32 : i32
    %c0_i32 = arith.constant 0 : i32
    %4 = arith.maxsi %3, %c0_i32 : i32
    %5 = arith.select %2, %4, %arg1 : i32
    %c4_i32 = arith.constant 4 : i32
    %6 = arith.muli %arg0, %c4_i32 : i32
    %7 = arith.addi %6, %5 : i32
    %8 = arith.index_cast %7 : i32 to index
    %9 = memref.load %arg3[%8] : memref<8xi32, #tpu.memory_space<smem>>
    %c1_i32_0 = arith.constant 1 : i32
    %10 = arith.select %2, %c1_i32_0, %arg2 : i32
    %c0_i32_1 = arith.constant 0 : i32
    %c0_i32_2 = arith.constant 0 : i32
    return %9, %c0_i32_1, %10 : i32, i32, i32
  }
  func.func @transform_2(%arg0: i32, %arg1: i32, %arg2: i32, %arg3: memref<8xi32, #tpu.memory_space<smem>>, %arg4: memref<2xi32, #tpu.memory_space<smem>>) -> (i32, i32, i32) {
    %0 = arith.index_cast %arg0 : i32 to index
    %1 = memref.load %arg4[%0] : memref<2xi32, #tpu.memory_space<smem>>
    %2 = arith.cmpi sge, %arg1, %1 : i32
    %c1_i32 = arith.constant 1 : i32
    %3 = arith.subi %1, %c1_i32 : i32
    %c0_i32 = arith.constant 0 : i32
    %4 = arith.maxsi %3, %c0_i32 : i32
    %5 = arith.select %2, %4, %arg1 : i32
    %c4_i32 = arith.constant 4 : i32
    %6 = arith.muli %arg0, %c4_i32 : i32
    %7 = arith.addi %6, %5 : i32
    %8 = arith.index_cast %7 : i32 to index
    %9 = memref.load %arg3[%8] : memref<8xi32, #tpu.memory_space<smem>>
    %c1_i32_0 = arith.constant 1 : i32
    %10 = arith.select %2, %c1_i32_0, %arg2 : i32
    %c0_i32_1 = arith.constant 0 : i32
    %c0_i32_2 = arith.constant 0 : i32
    return %9, %10, %c0_i32_1 : i32, i32, i32
  }
  func.func @transform_3(%arg0: i32, %arg1: i32, %arg2: i32, %arg3: memref<8xi32, #tpu.memory_space<smem>>, %arg4: memref<2xi32, #tpu.memory_space<smem>>) -> (i32, i32, i32) {
    %0 = arith.index_cast %arg0 : i32 to index
    %1 = memref.load %arg4[%0] : memref<2xi32, #tpu.memory_space<smem>>
    %2 = arith.cmpi sge, %arg1, %1 : i32
    %c1_i32 = arith.constant 1 : i32
    %3 = arith.subi %1, %c1_i32 : i32
    %c0_i32 = arith.constant 0 : i32
    %4 = arith.maxsi %3, %c0_i32 : i32
    %5 = arith.select %2, %4, %arg1 : i32
    %c4_i32 = arith.constant 4 : i32
    %6 = arith.muli %arg0, %c4_i32 : i32
    %7 = arith.addi %6, %5 : i32
    %c0_i32_0 = arith.constant 0 : i32
    %c0_i32_1 = arith.constant 0 : i32
    %c0_i32_2 = arith.constant 0 : i32
    return %7, %c0_i32_0, %c0_i32_1 : i32, i32, i32
  }
  func.func @transform_4(%arg0: i32, %arg1: i32, %arg2: i32, %arg3: memref<8xi32, #tpu.memory_space<smem>>, %arg4: memref<2xi32, #tpu.memory_space<smem>>) -> (i32, i32) {
    %c0_i32 = arith.constant 0 : i32
    %c0_i32_0 = arith.constant 0 : i32
    return %arg0, %c0_i32 : i32, i32
  }
}

</mosaic_0001>

<bundles_post_ra>
// kernel: tpu_custom_call.1
= control target key start
LH: loop header
LB: loop body
LE: loop exit
PB: predicated region body
PF: predicated region fallthrough
CT: control target
= control target key end

     0   :  { %s1369_s27 = smov [#allocation4]   ;;  %s1370_s28 = smov [#allocation5]   ;;  %s1903_s0 = inlined_call_operand.vmem [shape: s32[8], index: 0, kind: input, shape index: {}]   ;;  %s1904_s2 = inlined_call_operand.vmem [shape: bf16[16,128], index: 2, kind: input, shape index: {}]   ;;  %s1905_s3 = inlined_call_operand.hbm [shape: bf16[4,128,256], index: 3, kind: input, shape index: {}]   ;;  %s1906_s4 = inlined_call_operand.hbm [shape: bf16[4,256,128], index: 4, kind: input, shape index: {}]   ;;  %s1907_s5 = inlined_call_operand.vmem [shape: f32[8,8,1], index: 5, kind: input, shape index: {}]   ;;  %s1908_s6 = inlined_call_operand.hbm [shape: f32[16,128], index: 6, kind: output, shape index: {}]   ;;  %s1909_s1 = inlined_call_operand.vmem [shape: s32[2], index: 1, kind: input, shape index: {}]  }
   0x1   :  { %1935 = sst [smem:[#allocation41_spill]] %s1904_s2  ;;  %s12_s23 = sshll.u32 %s1903_s0, 4  ;;  %s13_s23 = int_to_ptr.vmem [resolvable:$true] %s12_s23 }
   0x2   :  { %1936 = sst [smem:[#allocation42_spill]] %s1905_s3  ;;  %s17_s26 = sshll.u32 %s1909_s1, 4  ;;  %s18_s26 = int_to_ptr.vmem [resolvable:$true] %s17_s26 }
   0x3   :  { %1937 = sst [smem:[#allocation43_spill]] %s1906_s4 }
   0x4   :  { %1938 = sst [smem:[#allocation44_spill]] %s1907_s5 }
   0x5   :  { %1939 = sst [smem:[#allocation45_spill]] %s1908_s6 }
   0x6   :  { %15 = dma.vmem_to_smem %s13_s23, 16, %s1369_s27, [#allocation3] }
   0x7   :  { %20 = dma.vmem_to_smem %s18_s26, 16, %s1370_s28, [#allocation3] }
   0x8   :  { %1291 = dma.done.wait [#allocation3], 32 }
   0x9   :  { %1292 = vsyncadd [#allocation3], 4294967264 }
   0xa   :  { %23 = sfence }
   0xb   :  { %24 = vsyncpa [#allocation7], 0 }
   0xc   :  { %26 = vsyncpa [#allocation7 + $0x1], 0 }
   0xd   :  { %27 = vsyncpa [#allocation10], 0 }
   0xe   :  { %29 = vsyncpa [#allocation10 + $0x1], 0 }
   0xf   :  { %30 = vsyncpa [#allocation8], 0 }
  0x10   :  { %32 = vsyncpa [#allocation8 + $0x1], 0  ;;  %s1417_s0 = smov 0   ;;  %s1419_s29 = smov 0  }
  0x11   :  { %s1421_s1 = smov 0   ;;  %s1423_s30 = smov 0  }
  0x12   :  { %s1425_s7 = smov 0   ;;  %s1427_s8 = smov 0  }
  0x13   :  { %s1429_s9 = smov 0   ;;  %s1431_s10 = smov 0  }
  0x14   :  { %s1433_s11 = smov 0   ;;  %s1435_s12 = smov 0  }
  0x15   :  { %s1437_s13 = smov 0   ;;  %s1439_s14 = smov 0  }
  0x16   :  { %s1441_s15 = smov 0   ;;  %s1443_s16 = smov 0  }
  0x17   :  { %s1445_s17 = smov 0   ;;  %s1447_s18 = smov 0  }
  0x18 LB: > { %1940 = sst [smem:[#allocation24_spill]] %s1315_s1  ;;  %s50_s19 = sadd.s32 1, %s1355_s15  ;;  %s1367_s18 = sphi %s1447_s18, %s38_s18   ;;  %s1363_s17 = sphi %s1445_s17, %s2026_s17   ;;  %s1359_s16 = sphi %s1443_s16, %s2025_s16   ;;  %s1355_s15 = sphi %s1441_s15, %s2024_s15   ;;  %s1351_s14 = sphi %s1439_s14, %s2012_s14   ;;  %s1347_s13 = sphi %s1437_s13, %s2023_s13   ;;  %s1343_s12 = sphi %s1435_s12, %s2022_s12   ;;  %s1339_s11 = sphi %s1433_s11, %s2011_s11   ;;  %s1335_s10 = sphi %s1431_s10, %s2021_s10   ;;  %s1331_s9 = sphi %s1429_s9, %s2020_s9   ;;  %s1327_s8 = sphi %s1427_s8, %s2009_s8   ;;  %s1323_s7 = sphi %s1425_s7, %s2019_s7   ;;  %s1319_s30 = sphi %s1423_s30, %s2018_s30   ;;  %s1315_s1 = sphi %s1421_s1, %s2007_s1   ;;  %s1311_s29 = sphi %s1419_s29, %s2017_s29   ;;  %s1307_s0 = sphi %s1417_s0, %s2016_s0  }
  0x19   : > { %1941 = sst [smem:[#allocation25_spill]] %s1327_s8  ;;  %p51_p0 = scmp.ge.s32.totalorder %s50_s19, 2 }
  0x1a   : > { %1942 = sst [smem:[#allocation26_spill]] %s1339_s11  ;;  %s53_s20 = sadd.s32 1, %s1359_s16 }
  0x1b   : > { %1943 = sst [smem:[#allocation27_spill]] %s1343_s12  ;;  %s1910_s22 = sadd.s32 4294967295, %s1367_s18  }
  0x1c   : > { %1944 = sst [smem:[#allocation28_spill]] %s1347_s13  ;;  %s2028_s20 = smov (!%p51_p0, %s53_s20), %s1359_s16 }
  0x1d   : > { %1945 = sst [smem:[#allocation29_spill]] %s1351_s14  ;;  %s2030_s19 = smov (%p51_p0, %s50_s19), 0 }
  0x1e   : > { %1946 = sst [smem:[#allocation30_spill]] %s1363_s17  ;;  %p55_p1 = scmp.ge.s32.totalorder %s2028_s20, 4 }
  0x1f   : > { %s87_s21 = sld [smem:[#allocation5 + %s1363_s17]]  ;;  %s57_s24 = sadd.s32 1, %s1363_s17 }
  0x20   : > { %1947 = sst [smem:[#allocation31_spill]] %s2030_s19  ;;  %s1507_s25 = sshll.u32 %s1363_s17, 2 }
  0x21   : > { %s2032_s20 = smov (%p55_p1, %s2028_s20), 0  ;;  %s2034_s24 = smov (!%p55_p1, %s57_s24), %s1363_s17 }
  0x22   : > { %1948 = sst [smem:[#allocation32_spill]] %s2032_s20  ;;  %p125_p2 = scmp.ne.s32.totalorder %s1335_s10, %s1331_s9 }
  0x23   : > { %p59_p3 = scmp.ge.s32.totalorder %s2034_s24, 2  ;;  %p1518_p6 = scmp.eq.s32.totalorder %s1910_s22, 0 }
  0x24   : > { %p119_p7 = scmp.ne.s32.totalorder %s1339_s11, %s1335_s10  ;;  %p120_p8 = scmp.eq.s32.totalorder %s1367_s18, 0 }
  0x25   : > { %s824_s27 = sadd.s32 4294967295, %s87_s21  ;;  %p88_p5 = scmp.ge.s32.totalorder %s1359_s16, %s87_s21 }
  0x26   : > { %p90_p4 = scmp.gt.s32.totalorder %s824_s27, 0  ;;  %s2036_s24 = smov (%p59_p3, %s2034_s24), 0 }
  0x27   : > { %1950 = sst [smem:[#allocation33_spill]] %s2036_s24  ;;  %p1531_p9 = por %p1518_p6, %p125_p2 }
  0x28   : > { %s2038_s27 = smov (!%p90_p4, %s824_s27), 0  ;;  %s97_s23 = sld [smem:[#allocation5 + %s2036_s24]] }
  0x29   : > { %s2040_s27 = smov (!%p88_p5, %s2038_s27), %s1359_s16  ;;  %s135_s26 = sld [smem:[#allocation5 + %s1363_s17]] }
  0x2a   : > { %s1951_s9 = scalar_select %p1531_p9, 1, 0 }
  0x2b   : > { %s1536_s21 = scalar_select %p88_p5, 1, %s1355_s15 }
  0x2c   : > { %1952 = sst [smem:[#allocation34_spill]] %s1951_s9  ;;  %s94_s22 = sadd.s32 %s1507_s25, %s2040_s27 }
  0x2d   : > { %s1542_s5 = sld [smem:[#allocation5 + %s2036_s24]]  ;;  %s1953_s14 = sshll.u32 %s2036_s24, 2 }
  0x2e   : > { %p98_p10 = scmp.ge.s32.totalorder %s2032_s20, %s97_s23  ;;  %s826_s2 = sadd.s32 4294967295, %s97_s23 }
  0x2f   : > { %s95_s12 = sld [smem:[#allocation4 + %s94_s22]]  ;;  %p100_p11 = scmp.gt.s32.totalorder %s826_s2, 0 }
  0x30   : > { %s106_s13 = scalar_select %p98_p10, 1, %s2030_s19 }
  0x31   : > { %s2042_s2 = smov (!%p100_p11, %s826_s2), 0  ;;  %p136_p12 = scmp.ge.s32.totalorder %s1359_s16, %s135_s26 }
  0x32   : > { %s108_s27 = ssub.s32 %s1536_s21, %s106_s13  ;;  %s2044_s2 = smov (!%p98_p10, %s2042_s2), %s2032_s20 }
  0x33   : > { %s828_s6 = sadd.s32 4294967295, %s135_s26  ;;  %p146_p13 = scmp.ge.s32.totalorder %s2032_s20, %s1542_s5 }
  0x34   : > { %s104_s9 = sadd.s32 %s1953_s14, %s2044_s2  ;;  %p138_p0 = scmp.gt.s32.totalorder %s828_s6, 0 }
  0x35   : > { %s105_s23 = sld [smem:[#allocation4 + %s104_s9]]  ;;  %s830_s22 = sadd.s32 4294967295, %s1542_s5 }
  0x36   : > { %s2046_s6 = smov (!%p138_p0, %s828_s6), 0  ;;  %p148_p1 = scmp.gt.s32.totalorder %s830_s22, 0 }
  0x37   : > { %s1555_s13 = scalar_select %p136_p12, 1, %s1355_s15 }
  0x38   : > { %s2048_s6 = smov (!%p136_p12, %s2046_s6), %s1359_s16  ;;  %p173_p2 = scmp.ne.s32.totalorder %s1323_s7, %s1319_s30 }
  0x39   : > { %s142_s2 = sadd.s32 %s1507_s25, %s2048_s6  ;;  %s225_s14 = ssub.s32 %s1363_s17, %s2036_s24 }
  0x3a   : > { %s143_s9 = sld [smem:[#allocation4 + %s142_s2]]  ;;  %p1565_p3 = por %p173_p2, %p1518_p6 }
  0x3b   : > { %s107_s26 = ssub.s32 %s95_s12, %s105_s23  ;;  %p226_p5 = scmp.eq.s32.totalorder %s225_s14, 0 }
  0x3c   : > { %s109_s21 = sor.u32 %s108_s27, %s107_s26  ;;  %s2050_s22 = smov (!%p148_p1, %s830_s22), 0 }
  0x3d   : > { %s1954_s4 = scalar_select %p1565_p3, 1, 0 }
  0x3e   : > { %p110_p4 = scmp.eq.s32.totalorder %s109_s21, 0  ;;  %s1955_s6 = sadd.s32 1, %s1339_s11 }
  0x3f   : > { %s2052_s22 = smov (!%p146_p13, %s2050_s22), %s2032_s20  ;;  %s1957_s28 = sshll.u32 %s2036_s24, 2 }
  0x40   : > { %s1572_s30 = scalar_select %p110_p4, %s1339_s11, %s1955_s6  }
  0x41   : > { %s154_s12 = scalar_select %p146_p13, 1, %s2030_s19 }
  0x42   : > { %1956 = sst [smem:[#allocation35_spill]] %s1572_s30  ;;  %s152_s27 = sadd.s32 %s1957_s28, %s2052_s22 }
  0x43   : > { %s228_s23 = sadd.s32 1, %s1315_s1  ;;  %s153_s2 = sld [smem:[#allocation4 + %s152_s27]] }
  0x44   : > { %s156_s26 = ssub.s32 %s1555_s13, %s154_s12  ;;  %p238_p6 = scmp.ne.s32.totalorder %s1315_s1, %s1311_s29 }
  0x45   : > { %s1587_s21 = scalar_select %p226_p5, %s1315_s1, %s228_s23  }
  0x46   : > { %s1959_s14 = sadd.s32 4294967295, %s1367_s18   ;;  %p244_p11 = scmp.ne.s32.totalorder %s1311_s29, %s1307_s0 }
  0x47   : > { %1958 = sst [smem:[#allocation36_spill]] %s1587_s21  ;;  %p239_p10 = scmp.eq.s32.totalorder %s1959_s14, 15 }
  0x48   : > { %s1960_s6 = sadd.s32 4294967294, %s1367_s18   ;;  %p1606_p0 = por %p120_p8, %p119_p7 }
  0x49   : > { %p245_p12 = scmp.eq.s32.totalorder %s1960_s6, 15  ;;  %p1597_p13 = por %p239_p10, %p238_p6 }
  0x4a   : > { %s155_s12 = ssub.s32 %s143_s9, %s153_s2  ;;  %s160_s28 = sadd.s32 1, %s1327_s8 }
  0x4b   : > { %s1961_s5 = scalar_select %p1597_p13, 1, 0 }
  0x4c   : > { %p1610_p1 = por %p245_p12, %p244_p11  ;;  %s157_s27 = sor.u32 %s156_s26, %s155_s12 }
  0x4d   : > { %1962 = sst [smem:[#allocation37_spill]] %s1961_s5  ;;  %p1924_p2 = scmp.lt.s32.totalorder %s1367_s18, 16 }
  0x4e   : > { %s1964_s13 = scalar_select %p1610_p1, 1, 0 }
  0x4f   : > { %p158_p4 = scmp.eq.s32.totalorder %s157_s27, 0  ;;  %p1620_p7 = pnand %p1924_p2, %p1606_p0 }
  0x50   : > { %1965 = sst [smem:[#allocation38_spill]] %s1964_s13  ;;  %s1918_s2 = sand.u32 1, %s1339_s11  }
  0x51   : > { %s1625_s14 = scalar_select %p158_p4, %s1327_s8, %s160_s28  }
  0x52   : > { %s942_s6 = scalar_select %p1606_p0, [#allocation5], [#allocation12] }
  0x53   : > { %1967 = sst [smem:[#allocation39_spill]] %s1625_s14  ;;  %p167_p5 = scmp.ne.s32.totalorder %s1327_s8, %s1323_s7 }
  0x54   : > { %s943_s9 = scalar_select %p1606_p0, %s1363_s17, 0 }
  0x55   : > { %s2054_s6 = smov (!%p1924_p2, %s942_s6), [#allocation16]  ;;  %s838_s12 = sshll.u32 %s1918_s2, 6 }
  0x56   : > { %s2056_s9 = smov (!%p1924_p2, %s943_s9), 0  ;;  %p1645_p6 = por %p167_p5, %p120_p8 }
  0x57   : > { %s277_s26 = sld [smem:[%s2054_s6 + %s2056_s9]]  ;;  %s276_s20 = scalar_lea.vmem [#allocation6], %s838_s12 }
  0x58   : > { %s944_s28 = scalar_select %p1606_p0, [#allocation4], [#allocation13] }
  0x59   : > { %s947_s6 = scalar_select %p1645_p6, [#allocation5], [#allocation14] }
  0x5a   : > { %s2058_s28 = smov (!%p1924_p2, %s944_s28), [#allocation17]  ;;  %s1661_s19 = sshll.u32 %s276_s20, 4 }
  0x5b   : > { %s948_s9 = scalar_select %p1645_p6, %s1363_s17, 0 }
  0x5c   : > { %1969 = sst [smem:[#allocation40_spill]] %s1661_s19  ;;  %s2066_s6 = smov (!%p1924_p2, %s947_s6), [#allocation18] }
  0x5d   : > { %s839_s24 = sadd.s32 4294967295, %s277_s26  ;;  %p278_p10 = scmp.ge.s32.totalorder %s1359_s16, %s277_s26 }
  0x5e   : > { %p280_p11 = scmp.gt.s32.totalorder %s839_s24, 0  ;;  %s2070_s9 = smov (!%p1924_p2, %s948_s9), 0 }
  0x5f   : > { %s1672_s14 = sld [smem:[%s2066_s6 + %s2070_s9]]  ;;  %p1678_p8 = pnand %p1924_p2, %p1645_p6 }
  0x60   : > { %s2060_s24 = smov (!%p280_p11, %s839_s24), 0  ;;  %p849_p12 = scmp.ge.s32.totalorder %s1367_s18, 1 }
  0x61   : > { %s2062_s24 = smov (!%p278_p10, %s2060_s24), %s1359_s16  ;;  %s1971_s3 = sld [smem:[#allocation42_spill]] }
  0x62   : > { %s284_s2 = sadd.s32 %s1507_s25, %s2062_s24 }
  0x63   : > { %s2064_s2 = smov (!%p1606_p0, %s284_s2), 0  ;;  %p360_p0 = scmp.lt.s32.totalorder %s1367_s18, 17 }
  0x64   : > { %s2068_s2 = smov (!%p1924_p2, %s2064_s2), 0  ;;  %p1143_p2 = pneg %p1620_p7 }
  0x65   : > { %s285_s30 = sld [smem:[%s2058_s28 + %s2068_s2]]  ;;  %s1927_s6 = sadd.s32 4294967295, %s1672_s14 }
  0x66   : > { %s286_s24 = scalar_select %p278_p10, 1, %s1355_s15 }
  0x67   : > { %p1695_p4 = scmp.gt.s32.totalorder %s1927_s6, 0  ;;  %p1699_p5 = pnand %p849_p12, %p360_p0 }
  0x6b   : > { %s841_s2 = sshll.u32 %s285_s30, 5  ;;  %s1974_s30 = sand.u32 1, %s1339_s11  }
  0x6c   : > { %s290_s12 = sadd.s32 %s841_s2, %s286_s24  ;;  %s273_s24 = scalar_lea.sflag [#allocation7], %s1974_s30 }
  0x6d   : > { %s842_s28 = sshll.u32 %s290_s12, 2 }
  0x6e   : > { %s292_s17 = scalar_lea.hbm %s1971_s3, %s842_s28 }
  0x6f   : > { %s293_s26 = sshll.u32 %s292_s17, 4  ;;  %s1146_s17 = scalar_lea.hbm %s1971_s3, 512  ;;  %s294_s26 = int_to_ptr.hbm [resolvable:$true] %s293_s26 }
  0x70   : > { %s1139_s2 = sshra.s32 %s294_s26, 4  ;;  %s1140_s2 = int_to_ptr.hbm [resolvable:$true] %s1139_s2 }
  0x71   : > { %s1141_s12 = scalar_lea.hbm %s1140_s2, 64  ;;  %p1147_p12 = scmp.lt.s32.totalorder %s1140_s2, %s1971_s3 }
  0x72   : > { %p1142_p11 = scmp.ne.s32.totalorder %s1140_s2, %s1141_s12  ;;  %p1148_p0 = scmp.lt.s32.totalorder %s1146_s17, %s1141_s12 }
  0x74   : > { %p1144_p1 = pnand %p1143_p2, %p1142_p11  ;;  %p1149_p10 = por %p1148_p0, %p1147_p12 }
  0x76   : > { %p1145_p13 = pneg %p1144_p1 }
  0x78   : > { %p1150_p3 = pnand %p1149_p10, %p1145_p13 }
  0x7a   : > { %1153 = shalt.err (!%p1150_p3)
}
  0x7b   : > { %s1371_s30 = smov 128   ;;  %s1975_s6 = sld [smem:[#allocation40_spill]] }
  0x7c   : > { %s1928_s22 = smov 64   ;;  %s1929_s2 = smov 4  }
  0x7d   : > { %s1977_s19 = sadd.s32 4294967295, %s1672_s14  ;;  %p1978_p3 = scmp.ge.s32.totalorder %s1359_s16, %s1672_s14 }
  0x7e   : > { %s2072_s19 = smov (!%p1695_p4, %s1977_s19), 0  ;;  %p1980_p13 = scmp.lt.s32.totalorder %s1367_s18, 16 }
  0x7f   : > { %s2074_s19 = smov (!%p1978_p3, %s2072_s19), %s1359_s16  ;;  %s305_s9 = sand.u32 1, %s1327_s8  }
  0x80   : > { %s1979_s28 = scalar_select %p1645_p6, [#allocation4], [#allocation15] }
  0x81   : > { %s1976_s12 = int_to_ptr.vmem [resolvable:$true] %s1975_s6  ;;  %s317_s17 = sadd.s32 %s1507_s25, %s2074_s19 }
  0x82   : > { %963 = dma.hbm_to_vmem [thread:$0]  (!%p1620_p7), %s294_s26, 1024, %s1976_s12, %s273_s24, %s1371_s30, %s1928_s22, %s1929_s2  }
  0x83   : > { %s2076_s28 = smov (!%p1980_p13, %s1979_s28), [#allocation19]  ;;  %s2078_s17 = smov (!%p1645_p6, %s317_s17), 0 }
  0x84   : > { %p1981_p1 = pmov %p1980_p13  ;;  %p1982_p2 = pmov %p1978_p3 }
  0x85   : > { %s843_s3 = sshll.u32 %s305_s9, 6  ;;  %s1983_s13 = sld [smem:[#allocation43_spill]] }
  0x86   : > { %s2080_s17 = smov (!%p1981_p1, %s2078_s17), 0  ;;  %s309_s24 = scalar_lea.vmem [#allocation9], %s843_s3 }
  0x87   : > { %s319_s23 = scalar_select %p1982_p2, 1, %s1355_s15 }
  0x88   : > { %s318_s6 = sld [smem:[%s2076_s28 + %s2080_s17]]  ;;  %s329_s30 = sshll.u32 %s309_s24, 4  ;;  %s330_s30 = int_to_ptr.vmem [resolvable:$true] %s329_s30 }
  0x89   : > { %s846_s26 = sshll.u32 %s319_s23, 4  ;;  %s306_s19 = scalar_lea.sflag [#allocation10], %s305_s9 }
  0x8a   : > { %p1173_p6 = pneg %p1678_p8 }
  0x8b   : > { %s1984_s5 = smov %s1983_s13 }
  0x8c   : > { %s1176_s17 = scalar_lea.hbm %s1984_s5, 512 }
  0x8e   : > { %s847_s21 = sshll.u32 %s318_s6, 5 }
  0x8f   : > { %s324_s12 = sadd.s32 %s847_s21, %s846_s26 }
  0x90   : > { %s848_s22 = sshll.u32 %s324_s12, 2 }
  0x91   : > { %s326_s25 = scalar_lea.hbm %s1983_s13, %s848_s22 }
  0x92   : > { %s327_s27 = sshll.u32 %s326_s25, 4  ;;  %s328_s27 = int_to_ptr.hbm [resolvable:$true] %s327_s27 }
  0x93   : > { %s1169_s8 = sshra.s32 %s328_s27, 4  ;;  %s1170_s8 = int_to_ptr.hbm [resolvable:$true] %s1169_s8 }
  0x94   : > { %s1171_s14 = scalar_lea.hbm %s1170_s8, 64  ;;  %p1177_p11 = scmp.lt.s32.totalorder %s1170_s8, %s1984_s5 }
  0x95   : > { %p1172_p7 = scmp.ne.s32.totalorder %s1170_s8, %s1171_s14  ;;  %p1178_p12 = scmp.lt.s32.totalorder %s1176_s17, %s1171_s14 }
  0x97   : > { %p1174_p4 = pnand %p1173_p6, %p1172_p7  ;;  %p1179_p0 = por %p1178_p12, %p1177_p11 }
  0x99   : > { %p1175_p10 = pneg %p1174_p4 }
  0x9b   : > { %p1180_p3 = pnand %p1179_p0, %p1175_p10 }
  0x9d   : > { %1183 = shalt.err (!%p1180_p3)
}
  0x9e   : > { %s1985_s11 = smov 4   ;;  %s1986_s13 = smov 64  }
  0x9f   : > { %970 = dma.hbm_to_vmem [thread:$0]  (!%p1678_p8), %s328_s27, 1024, %s330_s30, %s306_s19, %s1986_s13, %s1986_s13, %s1985_s11  }
  0xa0   : > { %364 = sbr.rel (%p1699_p5) target bundleno = 573 (0x23d), region = 36  ;;  %s366_s2 = sand.u32 (!%p1699_p5), 1, %s1335_s10  }
  0xa1   : > { %s850_s9 = sshll.u32 (!%p1699_p5), %s366_s2, 6  ;;  %s367_s26 = scalar_lea.sflag (!%p1699_p5), [#allocation7], %s366_s2 }
  0xa2   : > { %s1763_s21 = scalar_lea.vmem (!%p1699_p5), [#allocation6], %s850_s9 }
  0xa5   : > { %1294 = dma.done.wait (%p1531_p9), %s367_s26, 1024  }
  0xa6   : > { %1296 = vsyncadd (%p1531_p9), %s367_s26, 4294966272  ;;  %s376_s8 = sand.u32 1, %s1323_s7   ;;  %p1988_p8 = scmp.ne.s32.totalorder %s1954_s4, 0 }
  0xa7   : > { %s851_s20 = sshll.u32 %s376_s8, 6  ;;  %s377_s24 = scalar_lea.sflag [#allocation10], %s376_s8 }
  0xa8   : > { %s1770_s30 = scalar_lea.vmem [#allocation9], %s851_s20 }
  0xa9   : > { %1298 = dma.done.wait (%p1988_p8), %s377_s24, 1024  }
  0xaa   : > { %1300 = vsyncadd (%p1988_p8), %s377_s24, 4294966272  ;;  %s1989_s1 = sld [smem:[#allocation29_spill]]  ;;  %s424_s27 = sand.u32 1, %s1311_s29  }
  0xab   : > { %s1990_s12 = sld [smem:[#allocation28_spill]]  ;;  %s1780_s14 = sshll.u32 %s424_s27, 3 }
  0xac   : > { %s1991_s25 = sld [smem:[#allocation27_spill]] }
  0xad   : > { %s1993_s11 = sld [smem:[#allocation41_spill]] }
  0xae   : > { %s1994_s20 = sld [smem:[#allocation44_spill]] }
  0xb0   : > { %s452_s19 = sld [smem:[#allocation5 + %s1989_s1]]  ;;  %p427_p9 = scmp.lt.s32.totalorder %s1989_s1, 1 }
  0xb1   : > { %p472_p5 = scmp.eq.s32.totalorder %s1990_s12, 0  ;;  %s855_s22 = sshll.u32 %s1989_s1, 2 }
  0xb2   : > { %p473_p13 = scmp.eq.s32.totalorder %s1991_s25, 0  ;;  %s426_s25 = scalar_lea.vmem [#allocation11], %s1780_s14 }
  0xb3   : > { %s428_s4 = scalar_select %p427_p9, %s1989_s1, 1 }
  0xb4   : > { %p1786_p1 = pnand %p473_p13, %p472_p5 }
  0xb5   : > { %s853_s28 = sshll.u32 %s428_s4, 2 }
  0xb6   : > { %p453_p2 = scmp.ge.s32.totalorder %s1990_s12, %s452_s19  ;;  %s854_s17 = sadd.s32 4294967295, %s452_s19 }
  0xb7   : > { %p455_p7 = scmp.gt.s32.totalorder %s854_s17, 0  ;;  %s1794_s13 = scalar_lea.vmem %s1993_s11, %s853_s28 }
  0xb9   : > { %s2082_s17 = smov (!%p455_p7, %s854_s17), 0 }
  0xba   : > { %s2084_s17 = smov (!%p453_p2, %s2082_s17), %s1990_s12 }
  0xbb   : > { %s459_s2 = sadd.s32 %s855_s22, %s2084_s17 }
  0xbc   : > { %p460_p6 = scmp.lt.s32.totalorder %s459_s2, 7  ;;  %477 = sbr.rel (%p1786_p1) target bundleno = 195 (0xc3), region = 48 }
  0xbe   : > { %s2086_s2 = smov (!%p460_p6, %s459_s2), 7 }
  0xbf   : > { %s856_s9 = sshll.u32 %s2086_s2, 3 }
  0xc0   : > { %s463_s24 = scalar_lea.vmem %s1994_s20, %s856_s9 }
  0xc1   : > { %v1374_v0 = vmov 0.0  }
  0xc2   : > { %478 = vst [vmem:[#allocation2] sm:$0xff] %v1374_v0 }
  0xc3 PF: > { %s1995_s19 = sld [smem:[#allocation29_spill]] }
  0xc4   : > { %s1996_s28 = sld [smem:[#allocation28_spill]] }
  0xc9   : > { %s479_s4 = sld [smem:[#allocation5 + %s1995_s19]] }
  0xcf   : > { %p857_p4 = scmp.ge.s32.totalorder %s1996_s28, %s479_s4 }
  0xd1   : > { %483 = sbr.rel (%p857_p4) target bundleno = 533 (0x215), region = 52 }
  0xd6   : > { %v933_v1 = vld [vmem:[%s1763_s21 + $0x38] sm:$0xff]  ;;  %v932_v2 = vld [vmem:[%s1763_s21 + $0x30] sm:$0xff]  ;;  %v1375_v3 = vmov 0   ;;  %v931_v6 = vld [vmem:[%s1763_s21 + $0x28] sm:$0xff] }
  0xd7   : > { %565 = vmatpush.bf16.msra.mxu0 %v933_v1  ;;  %1112 = vset.pattern.permute.xlu0 %v1375_v3  ;;  %v587_v4 = vld [vmem:[%s463_s24] sm:$0xff]  ;;  %v930_v7 = vld [vmem:[%s1763_s21 + $0x20] sm:$0xff]  ;;  %v928_v9 = vld [vmem:[%s1763_s21 + $0x10] sm:$0xff] }
  0xd8   : > { %v941_v5 = vld [vmem:[%s1770_s30 + $0x38] sm:$0xff]  ;;  %590 = vperm.xlu0 %1112, %v587_v4   ;;  %v927_v10 = vld [vmem:[%s1763_s21 + $0x8] sm:$0xff]  ;;  %v926_v11 = vld [vmem:[%s1763_s21] sm:$0xff] }
  0xd9   : > { %644 = vmatpush.bf16.msra.mxu1 %v941_v5  ;;  %v929_v8 = vld [vmem:[%s1763_s21 + $0x18] sm:$0xff]  ;;  %v940_v13 = vld [vmem:[%s1770_s30 + $0x30] sm:$0xff]  ;;  %v939_v14 = vld [vmem:[%s1770_s30 + $0x28] sm:$0xff] }
  0xda   : > { %v484_v12 = vld [vmem:[%s1794_s13] sm:$0xf]  ;;  %v938_v15 = vld [vmem:[%s1770_s30 + $0x20] sm:$0xff]  ;;  %v936_v17 = vld [vmem:[%s1770_s30 + $0x10] sm:$0xff] }
  0xdb   : > { %566 = vmatpush.bf16.msra.mxu0 %v932_v2  ;;  %v937_v16 = vld [vmem:[%s1770_s30 + $0x18] sm:$0xff]  ;;  %v935_v18 = vld [vmem:[%s1770_s30 + $0x8] sm:$0xff]  ;;  %v934_v19 = vld [vmem:[%s1770_s30] sm:$0xff] }
  0xdc   : > { %v595_v34 = vld [vmem:[#allocation2] sm:$0xff] }
  0xdd   : > { %645 = vmatpush.bf16.msra.mxu1 %v940_v13 }
  0xdf   : > { %567 = vmatpush.bf16.msra.mxu0 %v931_v6 }
  0xe1   : > { %646 = vmatpush.bf16.msra.mxu1 %v939_v14 }
  0xe3   : > { %568 = vmatpush.bf16.msra.mxu0 %v930_v7 }
  0xe5   : > { %647 = vmatpush.bf16.msra.mxu1 %v938_v15 }
  0xe7   : > { %569 = vmatpush.bf16.msra.mxu0 %v929_v8 }
  0xe9   : > { %648 = vmatpush.bf16.msra.mxu1 %v937_v16 }
  0xeb   : > { %570 = vmatpush.bf16.msra.mxu0 %v928_v9 }
  0xed   : > { %649 = vmatpush.bf16.msra.mxu1 %v936_v17 }
  0xef   : > { %571 = vmatpush.bf16.msra.mxu0 %v927_v10 }
  0xf1   : > { %650 = vmatpush.bf16.msra.mxu1 %v935_v18 }
  0xf3   : > { %572 = vmatpush.bf16.msra.mxu0 %v926_v11 }
  0xf5   : > { %651 = vmatpush.bf16.msra.mxu1 %v934_v19 }
  0xf6   : > { %573 = vmatmul.bf16.vlgmr.msra.gmra.mxu0 %v484_v12 }
 0x14a   : > { %v591_v30 = vpop.permute.xlu0 %590 }
 0x173   : > { %v574_v20 = vpop.f32.mrf.mxu0 }
 0x174   : > { %v578_v21 = vmul.f32 %v574_v20, %v574_v20 }
 0x176   : > { %v579_v22 = vmul.f32 %v578_v21, %v574_v20 }
 0x178   : > { %v580_v23 = vmul.f32 0.044715, %v579_v22 }
 0x17a   : > { %v581_v24 = vadd.f32 %v580_v23, %v574_v20 }
 0x17b   : > { %v576_v25 = vpop.f32.mrf.mxu0 }
 0x17c   : > { %v582_v26 = vmul.f32 0.7978846, %v581_v24 }
 0x17e   : > { %1113 = vtanh.f32 %v582_v26 }
 0x184   : > { %v1114_v27 = vpop.eup %1113 }
 0x185   : > { %v584_v28 = vadd.f32 1.0, %v1114_v27 }
 0x187   : > { %v585_v29 = vmul.f32 0.5, %v584_v28 }
 0x189   : > { %v586_v31 = vmul.f32 %v585_v29, %v574_v20 }
 0x18b   : > { %v593_v32 = vmul.f32 %v591_v30, %v586_v31 }
 0x18d   : > { %v594_v33 = vpack.c.bf16 %v593_v32, %v593_v32 }
 0x18f   : > { %652 = vmatmul.bf16.vlgmr.msra.gmra.mxu1 %v594_v33 }
 0x20c   : > { %v653_v35 = vpop.f32.mrf.mxu1 }
 0x20d   : > { %v657_v36 = vadd.f32 %v653_v35, %v595_v34 }
 0x20f   : > { %658 = vst [vmem:[#allocation2] sm:$0xff] %v657_v36 }
 0x214   : > { %v655_v37 = vpop.f32.mrf.mxu1 }
 0x215 PF: > { %s1997_s21 = sld [smem:[#allocation28_spill]] }
 0x216   : > { %s1998_s30 = sld [smem:[#allocation27_spill]] }
 0x21b   : > { %p659_p10 = scmp.eq.s32.totalorder %s1997_s21, 3 }
 0x21c   : > { %p660_p11 = scmp.eq.s32.totalorder %s1998_s30, 1 }
 0x21e   : > { %p661_p12 = pnand %p660_p11, %p659_p10 }
 0x220   : > { %664 = sbr.rel (%p661_p12) target bundleno = 551 (0x227), region = 56 }
 0x225   : > { %v665_v38 = vld [vmem:[#allocation2] sm:$0xff] }
 0x226   : > { %666 = vst [vmem:[%s426_s25] sm:$0xff] %v665_v38 }
 0x227 PF: > { %s1999_s1 = sld [smem:[#allocation29_spill]]  ;;  %s680_s13 = sshll.u32 %s426_s25, 4  ;;  %s681_s13 = int_to_ptr.vmem [resolvable:$true] %s680_s13 }
 0x228   : > { %s2000_s12 = sld [smem:[#allocation37_spill]]  ;;  %s668_s2 = scalar_lea.sflag [#allocation8], %s424_s27 }
 0x229   : > { %s2001_s6 = sld [smem:[#allocation45_spill]] }
 0x22d   : > { %s923_s3 = sshll.u32 %s1999_s1, 3 }
 0x22e   : > { %p2002_p3 = scmp.ne.s32.totalorder %s2000_s12, 0 }
 0x22f   : > { %s678_s11 = scalar_lea.hbm %s2001_s6, %s923_s3  ;;  %s1219_s24 = scalar_lea.hbm %s2001_s6, 16 }
 0x230   : > { %s682_s22 = sshll.u32 %s678_s11, 4  ;;  %s683_s22 = int_to_ptr.hbm [resolvable:$true] %s682_s22 }
 0x231   : > { %s1213_s9 = sshra.s32 %s683_s22, 4  ;;  %s1214_s9 = int_to_ptr.hbm [resolvable:$true] %s1213_s9 }
 0x232   : > { %s1215_s26 = scalar_lea.hbm %s1214_s9, 8  ;;  %p1220_p5 = scmp.lt.s32.totalorder %s1214_s9, %s2001_s6 }
 0x233   : > { %p1216_p0 = scmp.ne.s32.totalorder %s1214_s9, %s1215_s26  ;;  %p1221_p13 = scmp.lt.s32.totalorder %s1219_s24, %s1215_s26 }
 0x235   : > { %p1217_p8 = pnand %p1216_p0, %p2002_p3  ;;  %p1222_p1 = por %p1221_p13, %p1220_p5 }
 0x237   : > { %p1218_p9 = pneg %p1217_p8 }
 0x239   : > { %p1223_p2 = pnand %p1222_p1, %p1218_p9 }
 0x23b   : > { %1226 = shalt.err (!%p1223_p2)
}
 0x23c   : > { %954 = dma.vmem_to_hbm [thread:$0]  (%p2002_p3), %s681_s13, 128, %s683_s22, %s668_s2  }
 0x23d PF: > { %s2003_s27 = sld [smem:[#allocation38_spill]]  ;;  %p976_p7 = scmp.ge.s32.totalorder %s1367_s18, 2 }
 0x23e   : > { %s694_s14 = sand.u32 1, %s1307_s0  }
 0x23f   : > { %s695_s25 = scalar_lea.sflag [#allocation8], %s694_s14 }
 0x243   : > { %p2004_p6 = scmp.ne.s32.totalorder %s2003_s27, 0 }
 0x245   : > { %p972_p4 = pnand %p976_p7, %p2004_p6 }
 0x247   : > { %p973_p10 = pneg %p972_p4 }
 0x249   : > { %1302 = dma.done.wait (%p973_p10), %s695_s25, 128  }
 0x24a   : > { %1304 = vsyncadd (%p973_p10), %s695_s25, 4294967168  ;;  %s38_s18 = sadd.s32 1, %s1367_s18   ;;  %s2006_s21 = sld [smem:[#allocation24_spill]] }
 0x24b   : > { %p1850_p11 = scmp.ge.s32.totalorder %s38_s18, 18   ;;  %s2007_s1 = sld [smem:[#allocation36_spill]] }
 0x24c   : > { %s2008_s12 = sld [smem:[#allocation25_spill]]  ;;  %s2016_s0 = smov %s1311_s29 }
 0x24d   : > { %s2009_s8 = sld [smem:[#allocation39_spill]]  ;;  %s2018_s30 = smov %s1323_s7 }
 0x24e   : > { %s2010_s3 = sld [smem:[#allocation26_spill]]  ;;  %s2020_s9 = smov %s1335_s10 }
 0x24f   : > { %s2011_s11 = sld [smem:[#allocation35_spill]]  ;;  %s2023_s13 = smov %s1359_s16 }
 0x250   : > { %s2012_s14 = sld [smem:[#allocation30_spill]]  ;;  %s2017_s29 = smov %s2006_s21 }
 0x251   : > { %s2013_s17 = sld [smem:[#allocation31_spill]] }
 0x252   : > { %s2014_s23 = sld [smem:[#allocation32_spill]]  ;;  %s2019_s7 = smov %s2008_s12 }
 0x253   : > { %s2015_s22 = sld [smem:[#allocation33_spill]]  ;;  %s2022_s12 = smov %s1355_s15 }
 0x254   : > { %s2021_s10 = smov %s2010_s3 }
 0x255   :  { %37 = sbr.rel (!%p1850_p11) target bundleno = 24 (0x18), region = 112 }
 0x257   : > { %s2024_s15 = smov %s2013_s17 }
 0x258   : > { %s2025_s16 = smov %s2014_s23 }
 0x259   : > { %s2026_s17 = smov %s2015_s22 }
 0x25a   :  { %701 = vsyncpa [#allocation7], 1 }
 0x25b   :  { %703 = vsyncpa [#allocation7 + $0x1], 1 }
 0x25c   :  { %704 = vsyncpa [#allocation10], 1 }
 0x25d   :  { %706 = vsyncpa [#allocation10 + $0x1], 1 }
 0x25e   :  { %707 = vsyncpa [#allocation8], 1 }
 0x25f   :  { %709 = vsyncpa [#allocation8 + $0x1], 1 }

</bundles_post_ra>
